<compile_context>
chip_gen: v6e
topology: v6e:2x2x1
jax: 0.10.0
libtpu: 0.0.40
codegen_flags: <defaults>
</compile_context>

<pallas_src>
import jax
import jax.numpy as jnp
from jax.experimental import pallas as pl
from jax.experimental.pallas import tpu as pltpu


def _hardswish_kernel(x_ref, o_ref):
    x = x_ref[...]
    xf = x.astype(jnp.float32)
    # hardswish(x) = x * clamp(x+3, 0, 6) / 6
    y = xf * (jnp.clip(xf + 3.0, 0.0, 6.0) * (1.0 / 6.0))
    o_ref[...] = y.astype(o_ref.dtype)


def hardswish(x: jax.Array) -> jax.Array:
    """Elementwise HardSwish matching torch: x * relu6(x+3)/6."""
    orig_shape = x.shape
    dtype = x.dtype
    n = x.size
    itemsize = jnp.dtype(dtype).itemsize
    # Sublane multiple for the second-to-last block dim (per-dtype packing).
    sub = {4: 8, 2: 16, 1: 32}.get(itemsize, 8)

    # Pick the widest lane dim (multiple of 128, up to 1024) dividing n so the
    # reshape is free (no data movement) and stores are lane-dense.
    lanes = None
    w = 1024
    while w >= 128:
        if n % w == 0:
            lanes = w
            break
        w //= 2

    flat = x.reshape(-1)
    padded = False
    if lanes is None:
        # Rare fallback: n not a multiple of 128 -> minimal pad to 128 lanes.
        # (Zero-padding is safe: hardswish(0) == 0 and the tail is dropped.)
        lanes = 128
        pad = (-n) % 128
        flat = jnp.pad(flat, (0, pad))
        padded = True

    rows = flat.size // lanes
    x2d = flat.reshape(rows, lanes)

    # ~2 MiB per block: big enough to hit ~85% of HBM roofline, small enough
    # that in+out double-buffered (4x block) fits default scoped VMEM on all
    # of v5e/v6e/v7x.
    target_block_bytes = 2 * 1024 * 1024
    tr_target = max(sub, (target_block_bytes // (lanes * itemsize)) // sub * sub)
    if rows <= tr_target:
        tr = rows            # single (or full-extent) block; equals full dim -> legal
    else:
        tr = tr_target       # multiple of `sub`, ragged last block masked by Pallas

    grid = (pl.cdiv(rows, tr),)

    out2d = pl.pallas_call(
        _hardswish_kernel,
        out_shape=jax.ShapeDtypeStruct((rows, lanes), dtype),
        grid=grid,
        in_specs=[pl.BlockSpec((tr, lanes), lambda i: (i, 0))],
        out_specs=pl.BlockSpec((tr, lanes), lambda i: (i, 0)),
        compiler_params=pltpu.CompilerParams(
            dimension_semantics=("parallel",),
            vmem_limit_bytes=32 * 1024 * 1024,
        ),
    )(x2d)

    if padded:
        return out2d.reshape(-1)[:n].reshape(orig_shape)
    return out2d.reshape(orig_shape)


def _reference_hardswish(x):
    return x * (jnp.clip(x + 3.0, 0.0, 6.0) / 6.0)


if __name__ == "__main__":
    key = jax.random.PRNGKey(0)
    # NCHW like PyTorch: batch=2, channels=4, spatial=16x16
    x = jax.random.normal(key, (2, 4, 16, 16), dtype=jnp.float32) * 4.0

    y = hardswish(x)
    y = jax.block_until_ready(y)

    y_ref = _reference_hardswish(x)
    assert y.shape == x.shape and y.dtype == x.dtype
    assert jnp.allclose(y, y_ref, atol=1e-6, rtol=1e-6)
    print("KERNEL_OK")
</pallas_src>

<mosaic_0001>
module attributes {stable_mosaic.version = 11 : i64} {
  func.func @_hardswish_kernel(%arg0: i32, %arg1: memref<2x1024xf32, #tpu.memory_space<vmem>>, %arg2: memref<2x1024xf32, #tpu.memory_space<vmem>>) attributes {dimension_semantics = [#tpu.dimension_semantics<parallel>], iteration_bounds = array<i64: 1>, scalar_prefetch = 0 : i64, scratch_operands = 0 : i64, tpu.core_type = #tpu.core_type<tc>, window_params = [{transform_indices = @transform_0, window_bounds = array<i64: 2, 1024>}, {transform_indices = @transform_1, window_bounds = array<i64: 2, 1024>}]} {
    %c0 = arith.constant 0 : index
    %c0_0 = arith.constant 0 : index
    %0 = vector.load %arg1[%c0, %c0_0] : memref<2x1024xf32, #tpu.memory_space<vmem>>, vector<2x1024xf32>
    %cst = arith.constant 3.000000e+00 : f32
    %1 = vector.broadcast %cst : f32 to vector<2x1024xf32>
    %2 = arith.addf %0, %1 : vector<2x1024xf32>
    %cst_1 = arith.constant 0.000000e+00 : f32
    %cst_2 = arith.constant 6.000000e+00 : f32
    %3 = vector.broadcast %cst_1 : f32 to vector<2x1024xf32>
    %4 = arith.maximumf %3, %2 : vector<2x1024xf32>
    %5 = vector.broadcast %cst_2 : f32 to vector<2x1024xf32>
    %6 = arith.minimumf %5, %4 : vector<2x1024xf32>
    %cst_3 = arith.constant 0.166666672 : f32
    %7 = vector.broadcast %cst_3 : f32 to vector<2x1024xf32>
    %8 = arith.mulf %6, %7 : vector<2x1024xf32>
    %9 = arith.mulf %0, %8 : vector<2x1024xf32>
    %c0_4 = arith.constant 0 : index
    %c0_5 = arith.constant 0 : index
    %10 = vector.load %arg2[%c0_4, %c0_5] : memref<2x1024xf32, #tpu.memory_space<vmem>>, vector<2x1024xf32>
    tpu.vector_store %arg2[%c0_4, %c0_5], %9 {strides = array<i32>} : memref<2x1024xf32, #tpu.memory_space<vmem>>, vector<2x1024xf32>,
    return
  }
  func.func @transform_0(%arg0: i32) -> (i32, i32) {
    %c0_i32 = arith.constant 0 : i32
    %c0_i32_0 = arith.constant 0 : i32
    return %arg0, %c0_i32 : i32, i32
  }
  func.func @transform_1(%arg0: i32) -> (i32, i32) {
    %c0_i32 = arith.constant 0 : i32
    %c0_i32_0 = arith.constant 0 : i32
    return %arg0, %c0_i32 : i32, i32
  }
}

</mosaic_0001>

<bundles_post_ra>
// kernel: tpu_custom_call.1
= control target key start
LH: loop header
LB: loop body
LE: loop exit
PB: predicated region body
PF: predicated region fallthrough
CT: control target
= control target key end

     0   :  { %6 = vsyncpa [#allocation3], 0  ;;  %s114_s0 = inlined_call_operand.hbm [shape: f32[2,1024], index: 0, kind: input, shape index: {}]   ;;  %s115_s1 = inlined_call_operand.hbm [shape: f32[2,1024], index: 1, kind: output, shape index: {}]  }
   0x1   :  { %7 = vsyncpa [#allocation4], 0  ;;  %s96_s6 = smov [#allocation2]  }
   0x2   :  { %s14_s7 = sshll.u32 %s96_s6, 4  ;;  %s15_s7 = int_to_ptr.vmem [resolvable:$true] %s14_s7 }
   0x3   :  { %s60_s8 = scalar_lea.vmem %s15_s7, 256  ;;  %p65_p1 = scmp.lt.s32.totalorder %s15_s7, %s15_s7 }
   0x4   :  { %p61_p0 = scmp.ne.s32.totalorder %s15_s7, %s60_s8  ;;  %p66_p2 = scmp.lt.s32.totalorder %s60_s8, %s60_s8 }
   0x6   :  { %p67_p3 = por %p66_p2, %p65_p1 }
   0x8   :  { %p68_p4 = pnand %p67_p3, %p61_p0 }
   0xa   :  { %71 = shalt.err (!%p68_p4)
}
   0xb   :  { %17 = dma.hbm_to_vmem [thread:$0]  %s114_s0, 256, %s15_s7, [#allocation3]  }
   0xc   :  { %92 = dma.done.wait [#allocation3], 256  }
   0xd   :  { %93 = vsyncadd [#allocation3], 4294967040  ;;  %v21_v0 = vld [vmem:[#allocation2] sm:$0xff]  ;;  %v22_v1 = vld [vmem:[#allocation2 + $0x8] sm:$0xff]  ;;  %s97_s11 = smov [#allocation5]  }
   0xe   :  { %v23_v2 = vadd.f32 3.0, %v21_v0  ;;  %v24_v3 = vadd.f32 3.0, %v22_v1  ;;  %s41_s12 = sshll.u32 %s97_s11, 4  ;;  %s42_s12 = int_to_ptr.vmem [resolvable:$true] %s41_s12 }
   0xf   :  { %s72_s0 = scalar_lea.vmem %s42_s12, 256  ;;  %p77_p6 = scmp.lt.s32.totalorder %s42_s12, %s42_s12 }
  0x10   :  { %v25_v4 = vmax.f32 %v23_v2, 0.0  ;;  %v26_v5 = vmax.f32 %v24_v3, 0.0  ;;  %p73_p5 = scmp.ne.s32.totalorder %s42_s12, %s72_s0  ;;  %p78_p7 = scmp.lt.s32.totalorder %s72_s0, %s72_s0 }
  0x12   :  { %v27_v6 = vmin.f32 %v25_v4, 6.0  ;;  %v28_v7 = vmin.f32 %v26_v5, 6.0  ;;  %p79_p8 = por %p78_p7, %p77_p6 }
  0x14   :  { %v29_v8 = vmul.f32 0.16666667, %v27_v6  ;;  %v30_v9 = vmul.f32 0.16666667, %v28_v7  ;;  %p80_p9 = pnand %p79_p8, %p73_p5 }
  0x16   :  { %v31_v10 = vmul.f32 %v29_v8, %v21_v0  ;;  %v32_v11 = vmul.f32 %v30_v9, %v22_v1 }
  0x18   :  { %33 = vst [vmem:[#allocation5] sm:$0xff] %v31_v10  ;;  %34 = vst [vmem:[#allocation5 + $0x8] sm:$0xff] %v32_v11 }
  0x19   :  { %83 = shalt.err (!%p80_p9)
}
  0x1a   :  { %44 = dma.vmem_to_hbm [thread:$0]  %s42_s12, 256, %s115_s1, [#allocation4]  }
  0x1b   :  { %94 = dma.done.wait [#allocation4], 256  }
  0x1c   :  { %95 = vsyncadd [#allocation4], 4294967040 }
  0x1d   :  { %48 = vsyncpa [#allocation3], 1 }
  0x1e   :  { %49 = vsyncpa [#allocation4], 1 }

</bundles_post_ra>
